<compile_context>
chip_gen: v6e
topology: v6e:2x2x1
jax: 0.10.0
libtpu: 0.0.40
codegen_flags: <defaults>
</compile_context>

<pallas_src>
import jax
import jax.numpy as jnp
from jax.experimental import pallas as pl
from jax.experimental.pallas import tpu as pltpu

# Small, self-consistent hyperparameters (the PyTorch file reads these from globals).
N_CLASS = 32    # vocab size == number of output classes
EMB_SIZE = 16
N_HIDDEN = 32
BATCH = 2
SEQ_LEN = 8

FUSED = 4 * N_HIDDEN      # 128: lane-dense fused gate width [i | f | g | o]
OUT_PAD = FUSED           # lane-dense padded classifier width (>= N_CLASS)

# Constant-slab row layout (all section starts are multiples of 8 sublanes).
CWB_ROW = 0                          # (N_CLASS, 4H) : C @ Wx_fused + fused bias
WH_ROW = CWB_ROW + N_CLASS           # (N_HIDDEN, 4H): fused hidden->gates weight
WOUT_ROW = WH_ROW + N_HIDDEN         # (N_HIDDEN, 4H): padded classifier weight
BOUT_ROW = WOUT_ROW + N_HIDDEN       # (1, 4H)       : padded classifier bias
SLAB_ROWS = ((BOUT_ROW + 1 + 7) // 8) * 8            # 104


def lstm_kernel(ids_ref, slab_ref, out_ref):
    """Single-invocation LSTM: in-kernel token gather + unrolled recurrence + proj.

    ids_ref:  (SEQ_LEN*BATCH,) int32 in SMEM, time-major token ids
    slab_ref: (SLAB_ROWS, FUSED) f32 in VMEM, packed constants:
                rows [0,32)   cwb   = C @ Wx_fused + (b_i_* + b_h_*)   [i|f|g|o]
                rows [32,64)  Wh_fused                                  [i|f|g|o]
                rows [64,96)  Wout (zero-padded lanes >= N_CLASS)
                row  96       bout (zero-padded lanes >= N_CLASS)
    out_ref:  (BATCH, OUT_PAD) f32
    """
    H = N_HIDDEN
    wh = slab_ref[WH_ROW:WH_ROW + H, :]                       # (H, 4H), loaded once

    # Lane mask selecting the g-gate columns [2H, 3H).
    lane = jax.lax.broadcasted_iota(jnp.int32, (BATCH, FUSED), 1)
    g_mask = jnp.logical_and(lane >= 2 * H, lane < 3 * H)

    h = jnp.zeros((BATCH, H), jnp.float32)
    c = jnp.zeros((BATCH, H), jnp.float32)
    o_t = jnp.zeros((BATCH, H), jnp.float32)

    # SEQ_LEN is a small static constant; the recurrence is fully unrolled so the
    # LLO scheduler sees the whole serial chain.
    for t in range(SEQ_LEN):
        # Gather the per-token input contribution (x_t @ Wx + fused bias) from the
        # precomputed table.  These loads depend only on ids/slab, not on h/c, so
        # they sit off the serial critical path.
        rows = [slab_ref[pl.ds(ids_ref[t * BATCH + j], 1), :]   # (1, 4H) each
                for j in range(BATCH)]
        xz = jnp.concatenate(rows, axis=0)                      # (B, 4H)

        # Exactly one MXU op per step on the recurrence chain.
        z = xz + jnp.dot(h, wh, preferred_element_type=jnp.float32)   # (B, 4H)

        # Single EUP transcendental per step on the fused tile:
        # tanh(x) = 2*sigmoid(2x) - 1 on the g lanes, plain sigmoid elsewhere.
        s = jax.nn.sigmoid(jnp.where(g_mask, z + z, z))
        act = jnp.where(g_mask, s + s - 1.0, s)

        i_t = act[:, 0:H]
        f_t = act[:, H:2 * H]
        g_t = act[:, 2 * H:3 * H]
        o_t = act[:, 3 * H:4 * H]
        c = f_t * c + i_t * g_t
        h = o_t * jnp.tanh(c)

    # PyTorch module: outputs = o_t[-1]; model = W(outputs) + b
    out_ref[...] = (jnp.dot(o_t, slab_ref[WOUT_ROW:WOUT_ROW + H, :],
                            preferred_element_type=jnp.float32)
                    + slab_ref[BOUT_ROW:BOUT_ROW + 1, :])


def init_params(key):
    """Deterministic parameter init mirroring the shapes in TextLSTM.__init__.

    Linear weights are stored already-transposed as (in_features, out_features)
    so the math is x @ W. All b_* parameters are ones (as in the PyTorch module).
    Biases are kept 2-D (1, dim) for TPU-friendly layout.
    """
    keys = jax.random.split(key, 10)
    p = {}
    p["C"] = jax.random.normal(keys[0], (N_CLASS, EMB_SIZE), jnp.float32)

    def linear_w(k, fan_in, fan_out):
        bound = 1.0 / jnp.sqrt(jnp.float32(fan_in))
        return jax.random.uniform(k, (fan_in, fan_out), jnp.float32, -bound, bound)

    gate_keys = jax.random.split(keys[1], 8)
    for idx, g in enumerate(("i", "f", "g", "o")):
        p[f"W_i_{g}"] = linear_w(gate_keys[2 * idx], EMB_SIZE, N_HIDDEN)
        p[f"W_h_{g}"] = linear_w(gate_keys[2 * idx + 1], N_HIDDEN, N_HIDDEN)
        p[f"b_i_{g}"] = jnp.ones((1, N_HIDDEN), jnp.float32)
        p[f"b_h_{g}"] = jnp.ones((1, N_HIDDEN), jnp.float32)

    p["W"] = linear_w(keys[2], N_HIDDEN, N_CLASS)
    p["b"] = jnp.ones((1, N_CLASS), jnp.float32)
    return p


def text_lstm_forward(x_ids, params):
    gates = ("i", "f", "g", "o")
    # Fuse the 4 gates along the lane axis: [i | f | g | o] -> width 4H = 128.
    wx_f = jnp.concatenate([params[f"W_i_{g}"] for g in gates], axis=1)     # (E, 4H)
    wh_f = jnp.concatenate([params[f"W_h_{g}"] for g in gates], axis=1)     # (H, 4H)
    b_f = jnp.concatenate([params[f"b_i_{g}"] + params[f"b_h_{g}"]
                           for g in gates], axis=1)                          # (1, 4H)

    # Per-token input contribution: row v = C[v] @ Wx_fused + fused bias.
    # This hoists the x-path matmul AND the embedding gather off the recurrence.
    cwb = jnp.dot(params["C"], wx_f) + b_f                                   # (32, 128)

    # Zero-pad the classifier to a lane-dense 128-wide output block.
    wout_p = jnp.zeros((N_HIDDEN, OUT_PAD), jnp.float32).at[:, :N_CLASS].set(params["W"])
    bout_p = jnp.zeros((1, OUT_PAD), jnp.float32).at[:, :N_CLASS].set(params["b"])

    # One sublane-stacked constant slab -> a single HBM->VMEM entry DMA.
    slab = jnp.zeros((SLAB_ROWS, FUSED), jnp.float32)
    slab = slab.at[CWB_ROW:CWB_ROW + N_CLASS, :].set(cwb)
    slab = slab.at[WH_ROW:WH_ROW + N_HIDDEN, :].set(wh_f)
    slab = slab.at[WOUT_ROW:WOUT_ROW + N_HIDDEN, :].set(wout_p)
    slab = slab.at[BOUT_ROW, :].set(bout_p[0])

    # Time-major flattened token ids: index t*BATCH + j  <->  x_ids[j, t].
    ids_tm = jnp.transpose(x_ids).reshape(-1).astype(jnp.int32)              # (S*B,)

    out = pl.pallas_call(
        lstm_kernel,
        out_shape=jax.ShapeDtypeStruct((BATCH, OUT_PAD), jnp.float32),
        in_specs=[pl.BlockSpec(memory_space=pltpu.MemorySpace.SMEM),   # ids
                  pl.BlockSpec(memory_space=pltpu.MemorySpace.VMEM)],  # constant slab
        out_specs=pl.BlockSpec(memory_space=pltpu.MemorySpace.VMEM),
    )(ids_tm, slab)
    return out[:, :N_CLASS]


def reference_forward(x_ids, params):
    """Pure-JAX mirror of the PyTorch forward (for correctness checking)."""
    emb = params["C"][x_ids]
    X = jnp.transpose(emb, (1, 0, 2))
    h = jnp.zeros((BATCH, N_HIDDEN), jnp.float32)
    c = jnp.zeros((BATCH, N_HIDDEN), jnp.float32)
    o_t = jnp.zeros((BATCH, N_HIDDEN), jnp.float32)
    for t in range(SEQ_LEN):
        x = X[t]
        i_t = jax.nn.sigmoid(x @ params["W_i_i"] + params["b_i_i"]
                             + h @ params["W_h_i"] + params["b_h_i"])
        f_t = jax.nn.sigmoid(x @ params["W_i_f"] + params["b_i_f"]
                             + h @ params["W_h_f"] + params["b_h_f"])
        g_t = jnp.tanh(x @ params["W_i_g"] + params["b_i_g"]
                       + h @ params["W_h_g"] + params["b_h_g"])
        o_t = jax.nn.sigmoid(x @ params["W_i_o"] + params["b_i_o"]
                             + h @ params["W_h_o"] + params["b_h_o"])
        c = f_t * c + i_t * g_t
        h = o_t * jnp.tanh(c)
    return o_t @ params["W"] + params["b"]


if __name__ == "__main__":
    key = jax.random.PRNGKey(0)
    k_param, k_data = jax.random.split(key)
    params = init_params(k_param)
    x_ids = jax.random.randint(k_data, (BATCH, SEQ_LEN), 0, N_CLASS, jnp.int32)

    out = jax.jit(text_lstm_forward)(x_ids, params)
    out = jax.block_until_ready(out)

    ref = reference_forward(x_ids, params)
    assert out.shape == (BATCH, N_CLASS)
    # atol slightly above 1e-5: the single-EUP tanh reconstruction (tanh = 2*sigmoid(2x)-1)
    # sanctioned by the perf review differs from a direct tanh by a few ULP per step.
    assert jnp.allclose(out, ref, rtol=1e-5, atol=2e-5), "mismatch vs JAX reference"
    print("KERNEL_OK")
</pallas_src>

<mosaic_0001>
module attributes {stable_mosaic.version = 11 : i64} {
  func.func @lstm_kernel(%arg0: memref<16xi32, #tpu.memory_space<smem>>, %arg1: memref<104x128xf32, #tpu.memory_space<vmem>>, %arg2: memref<2x128xf32, #tpu.memory_space<vmem>>) attributes {dimension_semantics = [], scalar_prefetch = 0 : i64, scratch_operands = 0 : i64, tpu.core_type = #tpu.core_type<tc>} {
    %c32 = arith.constant 32 : index
    %c0 = arith.constant 0 : index
    %0 = vector.load %arg1[%c32, %c0] : memref<104x128xf32, #tpu.memory_space<vmem>>, vector<32x128xf32>
    %1 = tpu.iota {dimensions = array<i32: 1>} : vector<2x128xi32>
    %c64_i32 = arith.constant 64 : i32
    %2 = vector.broadcast %c64_i32 : i32 to vector<2x128xi32>
    %3 = arith.cmpi sge, %1, %2 : vector<2x128xi32>
    %c96_i32 = arith.constant 96 : i32
    %4 = vector.broadcast %c96_i32 : i32 to vector<2x128xi32>
    %5 = arith.cmpi slt, %1, %4 : vector<2x128xi32>
    %6 = arith.andi %3, %5 : vector<2x128xi1>
    %cst = arith.constant 0.000000e+00 : f32
    %7 = vector.broadcast %cst : f32 to vector<2x32xf32>
    %cst_0 = arith.constant 0.000000e+00 : f32
    %8 = vector.broadcast %cst_0 : f32 to vector<2x32xf32>
    %c0_1 = arith.constant 0 : index
    %9 = memref.load %arg0[%c0_1] : memref<16xi32, #tpu.memory_space<smem>>
    %10 = arith.index_cast %9 : i32 to index
    %c0_2 = arith.constant 0 : index
    %11 = vector.load %arg1[%10, %c0_2] : memref<104x128xf32, #tpu.memory_space<vmem>>, vector<1x128xf32>
    %c1 = arith.constant 1 : index
    %12 = memref.load %arg0[%c1] : memref<16xi32, #tpu.memory_space<smem>>
    %13 = arith.index_cast %12 : i32 to index
    %c0_3 = arith.constant 0 : index
    %14 = vector.load %arg1[%13, %c0_3] : memref<104x128xf32, #tpu.memory_space<vmem>>, vector<1x128xf32>
    %15 = tpu.concatenate %11, %14 in 0 : vector<1x128xf32>, vector<1x128xf32> -> vector<2x128xf32>
    %cst_4 = arith.constant dense<0.000000e+00> : vector<2x128xf32>
    %16 = tpu.matmul %7, %0, %cst_4 {dimension_numbers = #tpu.dot_dimension_numbers<[1], [0], [0], [1], [0, 0, 1, 1], [], []>} : vector<2x32xf32>, vector<32x128xf32>, vector<2x128xf32> -> vector<2x128xf32>
    %17 = arith.addf %15, %16 : vector<2x128xf32>
    %18 = arith.addf %17, %17 : vector<2x128xf32>
    %19 = arith.select %6, %18, %17 : vector<2x128xi1>, vector<2x128xf32>
    %20 = arith.negf %19 : vector<2x128xf32>
    %21 = math.exp %20 : vector<2x128xf32>
    %cst_5 = arith.constant 1.000000e+00 : f32
    %22 = vector.broadcast %cst_5 : f32 to vector<2x128xf32>
    %23 = arith.addf %22, %21 : vector<2x128xf32>
    %24 = arith.divf %22, %23 : vector<2x128xf32>
    %25 = arith.addf %24, %24 : vector<2x128xf32>
    %cst_6 = arith.constant 1.000000e+00 : f32
    %26 = vector.broadcast %cst_6 : f32 to vector<2x128xf32>
    %27 = arith.subf %25, %26 : vector<2x128xf32>
    %28 = arith.select %6, %27, %24 : vector<2x128xi1>, vector<2x128xf32>
    %29 = vector.extract_strided_slice %28 {offsets = [0, 0], sizes = [2, 32], strides = [1, 1]} : vector<2x128xf32> to vector<2x32xf32>
    %30 = vector.extract_strided_slice %28 {offsets = [0, 32], sizes = [2, 32], strides = [1, 1]} : vector<2x128xf32> to vector<2x32xf32>
    %31 = vector.extract_strided_slice %28 {offsets = [0, 64], sizes = [2, 32], strides = [1, 1]} : vector<2x128xf32> to vector<2x32xf32>
    %32 = vector.extract_strided_slice %28 {offsets = [0, 96], sizes = [2, 32], strides = [1, 1]} : vector<2x128xf32> to vector<2x32xf32>
    %33 = arith.mulf %30, %8 : vector<2x32xf32>
    %34 = arith.mulf %29, %31 : vector<2x32xf32>
    %35 = arith.addf %33, %34 : vector<2x32xf32>
    %36 = math.tanh %35 : vector<2x32xf32>
    %37 = arith.mulf %32, %36 : vector<2x32xf32>
    %c2 = arith.constant 2 : index
    %38 = memref.load %arg0[%c2] : memref<16xi32, #tpu.memory_space<smem>>
    %39 = arith.index_cast %38 : i32 to index
    %c0_7 = arith.constant 0 : index
    %40 = vector.load %arg1[%39, %c0_7] : memref<104x128xf32, #tpu.memory_space<vmem>>, vector<1x128xf32>
    %c3 = arith.constant 3 : index
    %41 = memref.load %arg0[%c3] : memref<16xi32, #tpu.memory_space<smem>>
    %42 = arith.index_cast %41 : i32 to index
    %c0_8 = arith.constant 0 : index
    %43 = vector.load %arg1[%42, %c0_8] : memref<104x128xf32, #tpu.memory_space<vmem>>, vector<1x128xf32>
    %44 = tpu.concatenate %40, %43 in 0 : vector<1x128xf32>, vector<1x128xf32> -> vector<2x128xf32>
    %cst_9 = arith.constant dense<0.000000e+00> : vector<2x128xf32>
    %45 = tpu.matmul %37, %0, %cst_9 {dimension_numbers = #tpu.dot_dimension_numbers<[1], [0], [0], [1], [0, 0, 1, 1], [], []>} : vector<2x32xf32>, vector<32x128xf32>, vector<2x128xf32> -> vector<2x128xf32>
    %46 = arith.addf %44, %45 : vector<2x128xf32>
    %47 = arith.addf %46, %46 : vector<2x128xf32>
    %48 = arith.select %6, %47, %46 : vector<2x128xi1>, vector<2x128xf32>
    %49 = arith.negf %48 : vector<2x128xf32>
    %50 = math.exp %49 : vector<2x128xf32>
    %cst_10 = arith.constant 1.000000e+00 : f32
    %51 = vector.broadcast %cst_10 : f32 to vector<2x128xf32>
    %52 = arith.addf %51, %50 : vector<2x128xf32>
    %53 = arith.divf %51, %52 : vector<2x128xf32>
    %54 = arith.addf %53, %53 : vector<2x128xf32>
    %cst_11 = arith.constant 1.000000e+00 : f32
    %55 = vector.broadcast %cst_11 : f32 to vector<2x128xf32>
    %56 = arith.subf %54, %55 : vector<2x128xf32>
    %57 = arith.select %6, %56, %53 : vector<2x128xi1>, vector<2x128xf32>
    %58 = vector.extract_strided_slice %57 {offsets = [0, 0], sizes = [2, 32], strides = [1, 1]} : vector<2x128xf32> to vector<2x32xf32>
    %59 = vector.extract_strided_slice %57 {offsets = [0, 32], sizes = [2, 32], strides = [1, 1]} : vector<2x128xf32> to vector<2x32xf32>
    %60 = vector.extract_strided_slice %57 {offsets = [0, 64], sizes = [2, 32], strides = [1, 1]} : vector<2x128xf32> to vector<2x32xf32>
    %61 = vector.extract_strided_slice %57 {offsets = [0, 96], sizes = [2, 32], strides = [1, 1]} : vector<2x128xf32> to vector<2x32xf32>
    %62 = arith.mulf %59, %35 : vector<2x32xf32>
    %63 = arith.mulf %58, %60 : vector<2x32xf32>
    %64 = arith.addf %62, %63 : vector<2x32xf32>
    %65 = math.tanh %64 : vector<2x32xf32>
    %66 = arith.mulf %61, %65 : vector<2x32xf32>
    %c4 = arith.constant 4 : index
    %67 = memref.load %arg0[%c4] : memref<16xi32, #tpu.memory_space<smem>>
    %68 = arith.index_cast %67 : i32 to index
    %c0_12 = arith.constant 0 : index
    %69 = vector.load %arg1[%68, %c0_12] : memref<104x128xf32, #tpu.memory_space<vmem>>, vector<1x128xf32>
    %c5 = arith.constant 5 : index
    %70 = memref.load %arg0[%c5] : memref<16xi32, #tpu.memory_space<smem>>
    %71 = arith.index_cast %70 : i32 to index
    %c0_13 = arith.constant 0 : index
    %72 = vector.load %arg1[%71, %c0_13] : memref<104x128xf32, #tpu.memory_space<vmem>>, vector<1x128xf32>
    %73 = tpu.concatenate %69, %72 in 0 : vector<1x128xf32>, vector<1x128xf32> -> vector<2x128xf32>
    %cst_14 = arith.constant dense<0.000000e+00> : vector<2x128xf32>
    %74 = tpu.matmul %66, %0, %cst_14 {dimension_numbers = #tpu.dot_dimension_numbers<[1], [0], [0], [1], [0, 0, 1, 1], [], []>} : vector<2x32xf32>, vector<32x128xf32>, vector<2x128xf32> -> vector<2x128xf32>
    %75 = arith.addf %73, %74 : vector<2x128xf32>
    %76 = arith.addf %75, %75 : vector<2x128xf32>
    %77 = arith.select %6, %76, %75 : vector<2x128xi1>, vector<2x128xf32>
    %78 = arith.negf %77 : vector<2x128xf32>
    %79 = math.exp %78 : vector<2x128xf32>
    %cst_15 = arith.constant 1.000000e+00 : f32
    %80 = vector.broadcast %cst_15 : f32 to vector<2x128xf32>
    %81 = arith.addf %80, %79 : vector<2x128xf32>
    %82 = arith.divf %80, %81 : vector<2x128xf32>
    %83 = arith.addf %82, %82 : vector<2x128xf32>
    %cst_16 = arith.constant 1.000000e+00 : f32
    %84 = vector.broadcast %cst_16 : f32 to vector<2x128xf32>
    %85 = arith.subf %83, %84 : vector<2x128xf32>
    %86 = arith.select %6, %85, %82 : vector<2x128xi1>, vector<2x128xf32>
    %87 = vector.extract_strided_slice %86 {offsets = [0, 0], sizes = [2, 32], strides = [1, 1]} : vector<2x128xf32> to vector<2x32xf32>
    %88 = vector.extract_strided_slice %86 {offsets = [0, 32], sizes = [2, 32], strides = [1, 1]} : vector<2x128xf32> to vector<2x32xf32>
    %89 = vector.extract_strided_slice %86 {offsets = [0, 64], sizes = [2, 32], strides = [1, 1]} : vector<2x128xf32> to vector<2x32xf32>
    %90 = vector.extract_strided_slice %86 {offsets = [0, 96], sizes = [2, 32], strides = [1, 1]} : vector<2x128xf32> to vector<2x32xf32>
    %91 = arith.mulf %88, %64 : vector<2x32xf32>
    %92 = arith.mulf %87, %89 : vector<2x32xf32>
    %93 = arith.addf %91, %92 : vector<2x32xf32>
    %94 = math.tanh %93 : vector<2x32xf32>
    %95 = arith.mulf %90, %94 : vector<2x32xf32>
    %c6 = arith.constant 6 : index
    %96 = memref.load %arg0[%c6] : memref<16xi32, #tpu.memory_space<smem>>
    %97 = arith.index_cast %96 : i32 to index
    %c0_17 = arith.constant 0 : index
    %98 = vector.load %arg1[%97, %c0_17] : memref<104x128xf32, #tpu.memory_space<vmem>>, vector<1x128xf32>
    %c7 = arith.constant 7 : index
    %99 = memref.load %arg0[%c7] : memref<16xi32, #tpu.memory_space<smem>>
    %100 = arith.index_cast %99 : i32 to index
    %c0_18 = arith.constant 0 : index
    %101 = vector.load %arg1[%100, %c0_18] : memref<104x128xf32, #tpu.memory_space<vmem>>, vector<1x128xf32>
    %102 = tpu.concatenate %98, %101 in 0 : vector<1x128xf32>, vector<1x128xf32> -> vector<2x128xf32>
    %cst_19 = arith.constant dense<0.000000e+00> : vector<2x128xf32>
    %103 = tpu.matmul %95, %0, %cst_19 {dimension_numbers = #tpu.dot_dimension_numbers<[1], [0], [0], [1], [0, 0, 1, 1], [], []>} : vector<2x32xf32>, vector<32x128xf32>, vector<2x128xf32> -> vector<2x128xf32>
    %104 = arith.addf %102, %103 : vector<2x128xf32>
    %105 = arith.addf %104, %104 : vector<2x128xf32>
    %106 = arith.select %6, %105, %104 : vector<2x128xi1>, vector<2x128xf32>
    %107 = arith.negf %106 : vector<2x128xf32>
    %108 = math.exp %107 : vector<2x128xf32>
    %cst_20 = arith.constant 1.000000e+00 : f32
    %109 = vector.broadcast %cst_20 : f32 to vector<2x128xf32>
    %110 = arith.addf %109, %108 : vector<2x128xf32>
    %111 = arith.divf %109, %110 : vector<2x128xf32>
    %112 = arith.addf %111, %111 : vector<2x128xf32>
    %cst_21 = arith.constant 1.000000e+00 : f32
    %113 = vector.broadcast %cst_21 : f32 to vector<2x128xf32>
    %114 = arith.subf %112, %113 : vector<2x128xf32>
    %115 = arith.select %6, %114, %111 : vector<2x128xi1>, vector<2x128xf32>
    %116 = vector.extract_strided_slice %115 {offsets = [0, 0], sizes = [2, 32], strides = [1, 1]} : vector<2x128xf32> to vector<2x32xf32>
    %117 = vector.extract_strided_slice %115 {offsets = [0, 32], sizes = [2, 32], strides = [1, 1]} : vector<2x128xf32> to vector<2x32xf32>
    %118 = vector.extract_strided_slice %115 {offsets = [0, 64], sizes = [2, 32], strides = [1, 1]} : vector<2x128xf32> to vector<2x32xf32>
    %119 = vector.extract_strided_slice %115 {offsets = [0, 96], sizes = [2, 32], strides = [1, 1]} : vector<2x128xf32> to vector<2x32xf32>
    %120 = arith.mulf %117, %93 : vector<2x32xf32>
    %121 = arith.mulf %116, %118 : vector<2x32xf32>
    %122 = arith.addf %120, %121 : vector<2x32xf32>
    %123 = math.tanh %122 : vector<2x32xf32>
    %124 = arith.mulf %119, %123 : vector<2x32xf32>
    %c8 = arith.constant 8 : index
    %125 = memref.load %arg0[%c8] : memref<16xi32, #tpu.memory_space<smem>>
    %126 = arith.index_cast %125 : i32 to index
    %c0_22 = arith.constant 0 : index
    %127 = vector.load %arg1[%126, %c0_22] : memref<104x128xf32, #tpu.memory_space<vmem>>, vector<1x128xf32>
    %c9 = arith.constant 9 : index
    %128 = memref.load %arg0[%c9] : memref<16xi32, #tpu.memory_space<smem>>
    %129 = arith.index_cast %128 : i32 to index
    %c0_23 = arith.constant 0 : index
    %130 = vector.load %arg1[%129, %c0_23] : memref<104x128xf32, #tpu.memory_space<vmem>>, vector<1x128xf32>
    %131 = tpu.concatenate %127, %130 in 0 : vector<1x128xf32>, vector<1x128xf32> -> vector<2x128xf32>
    %cst_24 = arith.constant dense<0.000000e+00> : vector<2x128xf32>
    %132 = tpu.matmul %124, %0, %cst_24 {dimension_numbers = #tpu.dot_dimension_numbers<[1], [0], [0], [1], [0, 0, 1, 1], [], []>} : vector<2x32xf32>, vector<32x128xf32>, vector<2x128xf32> -> vector<2x128xf32>
    %133 = arith.addf %131, %132 : vector<2x128xf32>
    %134 = arith.addf %133, %133 : vector<2x128xf32>
    %135 = arith.select %6, %134, %133 : vector<2x128xi1>, vector<2x128xf32>
    %136 = arith.negf %135 : vector<2x128xf32>
    %137 = math.exp %136 : vector<2x128xf32>
    %cst_25 = arith.constant 1.000000e+00 : f32
    %138 = vector.broadcast %cst_25 : f32 to vector<2x128xf32>
    %139 = arith.addf %138, %137 : vector<2x128xf32>
    %140 = arith.divf %138, %139 : vector<2x128xf32>
    %141 = arith.addf %140, %140 : vector<2x128xf32>
    %cst_26 = arith.constant 1.000000e+00 : f32
    %142 = vector.broadcast %cst_26 : f32 to vector<2x128xf32>
    %143 = arith.subf %141, %142 : vector<2x128xf32>
    %144 = arith.select %6, %143, %140 : vector<2x128xi1>, vector<2x128xf32>
    %145 = vector.extract_strided_slice %144 {offsets = [0, 0], sizes = [2, 32], strides = [1, 1]} : vector<2x128xf32> to vector<2x32xf32>
    %146 = vector.extract_strided_slice %144 {offsets = [0, 32], sizes = [2, 32], strides = [1, 1]} : vector<2x128xf32> to vector<2x32xf32>
    %147 = vector.extract_strided_slice %144 {offsets = [0, 64], sizes = [2, 32], strides = [1, 1]} : vector<2x128xf32> to vector<2x32xf32>
    %148 = vector.extract_strided_slice %144 {offsets = [0, 96], sizes = [2, 32], strides = [1, 1]} : vector<2x128xf32> to vector<2x32xf32>
    %149 = arith.mulf %146, %122 : vector<2x32xf32>
    %150 = arith.mulf %145, %147 : vector<2x32xf32>
    %151 = arith.addf %149, %150 : vector<2x32xf32>
    %152 = math.tanh %151 : vector<2x32xf32>
    %153 = arith.mulf %148, %152 : vector<2x32xf32>
    %c10 = arith.constant 10 : index
    %154 = memref.load %arg0[%c10] : memref<16xi32, #tpu.memory_space<smem>>
    %155 = arith.index_cast %154 : i32 to index
    %c0_27 = arith.constant 0 : index
    %156 = vector.load %arg1[%155, %c0_27] : memref<104x128xf32, #tpu.memory_space<vmem>>, vector<1x128xf32>
    %c11 = arith.constant 11 : index
    %157 = memref.load %arg0[%c11] : memref<16xi32, #tpu.memory_space<smem>>
    %158 = arith.index_cast %157 : i32 to index
    %c0_28 = arith.constant 0 : index
    %159 = vector.load %arg1[%158, %c0_28] : memref<104x128xf32, #tpu.memory_space<vmem>>, vector<1x128xf32>
    %160 = tpu.concatenate %156, %159 in 0 : vector<1x128xf32>, vector<1x128xf32> -> vector<2x128xf32>
    %cst_29 = arith.constant dense<0.000000e+00> : vector<2x128xf32>
    %161 = tpu.matmul %153, %0, %cst_29 {dimension_numbers = #tpu.dot_dimension_numbers<[1], [0], [0], [1], [0, 0, 1, 1], [], []>} : vector<2x32xf32>, vector<32x128xf32>, vector<2x128xf32> -> vector<2x128xf32>
    %162 = arith.addf %160, %161 : vector<2x128xf32>
    %163 = arith.addf %162, %162 : vector<2x128xf32>
    %164 = arith.select %6, %163, %162 : vector<2x128xi1>, vector<2x128xf32>
    %165 = arith.negf %164 : vector<2x128xf32>
    %166 = math.exp %165 : vector<2x128xf32>
    %cst_30 = arith.constant 1.000000e+00 : f32
    %167 = vector.broadcast %cst_30 : f32 to vector<2x128xf32>
    %168 = arith.addf %167, %166 : vector<2x128xf32>
    %169 = arith.divf %167, %168 : vector<2x128xf32>
    %170 = arith.addf %169, %169 : vector<2x128xf32>
    %cst_31 = arith.constant 1.000000e+00 : f32
    %171 = vector.broadcast %cst_31 : f32 to vector<2x128xf32>
    %172 = arith.subf %170, %171 : vector<2x128xf32>
    %173 = arith.select %6, %172, %169 : vector<2x128xi1>, vector<2x128xf32>
    %174 = vector.extract_strided_slice %173 {offsets = [0, 0], sizes = [2, 32], strides = [1, 1]} : vector<2x128xf32> to vector<2x32xf32>
    %175 = vector.extract_strided_slice %173 {offsets = [0, 32], sizes = [2, 32], strides = [1, 1]} : vector<2x128xf32> to vector<2x32xf32>
    %176 = vector.extract_strided_slice %173 {offsets = [0, 64], sizes = [2, 32], strides = [1, 1]} : vector<2x128xf32> to vector<2x32xf32>
    %177 = vector.extract_strided_slice %173 {offsets = [0, 96], sizes = [2, 32], strides = [1, 1]} : vector<2x128xf32> to vector<2x32xf32>
    %178 = arith.mulf %175, %151 : vector<2x32xf32>
    %179 = arith.mulf %174, %176 : vector<2x32xf32>
    %180 = arith.addf %178, %179 : vector<2x32xf32>
    %181 = math.tanh %180 : vector<2x32xf32>
    %182 = arith.mulf %177, %181 : vector<2x32xf32>
    %c12 = arith.constant 12 : index
    %183 = memref.load %arg0[%c12] : memref<16xi32, #tpu.memory_space<smem>>
    %184 = arith.index_cast %183 : i32 to index
    %c0_32 = arith.constant 0 : index
    %185 = vector.load %arg1[%184, %c0_32] : memref<104x128xf32, #tpu.memory_space<vmem>>, vector<1x128xf32>
    %c13 = arith.constant 13 : index
    %186 = memref.load %arg0[%c13] : memref<16xi32, #tpu.memory_space<smem>>
    %187 = arith.index_cast %186 : i32 to index
    %c0_33 = arith.constant 0 : index
    %188 = vector.load %arg1[%187, %c0_33] : memref<104x128xf32, #tpu.memory_space<vmem>>, vector<1x128xf32>
    %189 = tpu.concatenate %185, %188 in 0 : vector<1x128xf32>, vector<1x128xf32> -> vector<2x128xf32>
    %cst_34 = arith.constant dense<0.000000e+00> : vector<2x128xf32>
    %190 = tpu.matmul %182, %0, %cst_34 {dimension_numbers = #tpu.dot_dimension_numbers<[1], [0], [0], [1], [0, 0, 1, 1], [], []>} : vector<2x32xf32>, vector<32x128xf32>, vector<2x128xf32> -> vector<2x128xf32>
    %191 = arith.addf %189, %190 : vector<2x128xf32>
    %192 = arith.addf %191, %191 : vector<2x128xf32>
    %193 = arith.select %6, %192, %191 : vector<2x128xi1>, vector<2x128xf32>
    %194 = arith.negf %193 : vector<2x128xf32>
    %195 = math.exp %194 : vector<2x128xf32>
    %cst_35 = arith.constant 1.000000e+00 : f32
    %196 = vector.broadcast %cst_35 : f32 to vector<2x128xf32>
    %197 = arith.addf %196, %195 : vector<2x128xf32>
    %198 = arith.divf %196, %197 : vector<2x128xf32>
    %199 = arith.addf %198, %198 : vector<2x128xf32>
    %cst_36 = arith.constant 1.000000e+00 : f32
    %200 = vector.broadcast %cst_36 : f32 to vector<2x128xf32>
    %201 = arith.subf %199, %200 : vector<2x128xf32>
    %202 = arith.select %6, %201, %198 : vector<2x128xi1>, vector<2x128xf32>
    %203 = vector.extract_strided_slice %202 {offsets = [0, 0], sizes = [2, 32], strides = [1, 1]} : vector<2x128xf32> to vector<2x32xf32>
    %204 = vector.extract_strided_slice %202 {offsets = [0, 32], sizes = [2, 32], strides = [1, 1]} : vector<2x128xf32> to vector<2x32xf32>
    %205 = vector.extract_strided_slice %202 {offsets = [0, 64], sizes = [2, 32], strides = [1, 1]} : vector<2x128xf32> to vector<2x32xf32>
    %206 = vector.extract_strided_slice %202 {offsets = [0, 96], sizes = [2, 32], strides = [1, 1]} : vector<2x128xf32> to vector<2x32xf32>
    %207 = arith.mulf %204, %180 : vector<2x32xf32>
    %208 = arith.mulf %203, %205 : vector<2x32xf32>
    %209 = arith.addf %207, %208 : vector<2x32xf32>
    %210 = math.tanh %209 : vector<2x32xf32>
    %211 = arith.mulf %206, %210 : vector<2x32xf32>
    %c14 = arith.constant 14 : index
    %212 = memref.load %arg0[%c14] : memref<16xi32, #tpu.memory_space<smem>>
    %213 = arith.index_cast %212 : i32 to index
    %c0_37 = arith.constant 0 : index
    %214 = vector.load %arg1[%213, %c0_37] : memref<104x128xf32, #tpu.memory_space<vmem>>, vector<1x128xf32>
    %c15 = arith.constant 15 : index
    %215 = memref.load %arg0[%c15] : memref<16xi32, #tpu.memory_space<smem>>
    %216 = arith.index_cast %215 : i32 to index
    %c0_38 = arith.constant 0 : index
    %217 = vector.load %arg1[%216, %c0_38] : memref<104x128xf32, #tpu.memory_space<vmem>>, vector<1x128xf32>
    %218 = tpu.concatenate %214, %217 in 0 : vector<1x128xf32>, vector<1x128xf32> -> vector<2x128xf32>
    %cst_39 = arith.constant dense<0.000000e+00> : vector<2x128xf32>
    %219 = tpu.matmul %211, %0, %cst_39 {dimension_numbers = #tpu.dot_dimension_numbers<[1], [0], [0], [1], [0, 0, 1, 1], [], []>} : vector<2x32xf32>, vector<32x128xf32>, vector<2x128xf32> -> vector<2x128xf32>
    %220 = arith.addf %218, %219 : vector<2x128xf32>
    %221 = arith.addf %220, %220 : vector<2x128xf32>
    %222 = arith.select %6, %221, %220 : vector<2x128xi1>, vector<2x128xf32>
    %223 = arith.negf %222 : vector<2x128xf32>
    %224 = math.exp %223 : vector<2x128xf32>
    %cst_40 = arith.constant 1.000000e+00 : f32
    %225 = vector.broadcast %cst_40 : f32 to vector<2x128xf32>
    %226 = arith.addf %225, %224 : vector<2x128xf32>
    %227 = arith.divf %225, %226 : vector<2x128xf32>
    %228 = arith.addf %227, %227 : vector<2x128xf32>
    %cst_41 = arith.constant 1.000000e+00 : f32
    %229 = vector.broadcast %cst_41 : f32 to vector<2x128xf32>
    %230 = arith.subf %228, %229 : vector<2x128xf32>
    %231 = arith.select %6, %230, %227 : vector<2x128xi1>, vector<2x128xf32>
    %232 = vector.extract_strided_slice %231 {offsets = [0, 96], sizes = [2, 32], strides = [1, 1]} : vector<2x128xf32> to vector<2x32xf32>
    %c64 = arith.constant 64 : index
    %c0_42 = arith.constant 0 : index
    %233 = vector.load %arg1[%c64, %c0_42] : memref<104x128xf32, #tpu.memory_space<vmem>>, vector<32x128xf32>
    %cst_43 = arith.constant dense<0.000000e+00> : vector<2x128xf32>
    %234 = tpu.matmul %232, %233, %cst_43 {dimension_numbers = #tpu.dot_dimension_numbers<[1], [0], [0], [1], [0, 0, 1, 1], [], []>} : vector<2x32xf32>, vector<32x128xf32>, vector<2x128xf32> -> vector<2x128xf32>
    %c96 = arith.constant 96 : index
    %c0_44 = arith.constant 0 : index
    %235 = vector.load %arg1[%c96, %c0_44] : memref<104x128xf32, #tpu.memory_space<vmem>>, vector<1x128xf32>
    %236 = vector.broadcast %235 : vector<1x128xf32> to vector<2x128xf32>
    %237 = arith.addf %234, %236 : vector<2x128xf32>
    %c0_45 = arith.constant 0 : index
    %c0_46 = arith.constant 0 : index
    %238 = vector.load %arg2[%c0_45, %c0_46] : memref<2x128xf32, #tpu.memory_space<vmem>>, vector<2x128xf32>
    tpu.vector_store %arg2[%c0_45, %c0_46], %237 {strides = array<i32>} : memref<2x128xf32, #tpu.memory_space<vmem>>, vector<2x128xf32>,
    return
  }
}

</mosaic_0001>

<bundles_post_ra>
// kernel: text_lstm_forward.1
= control target key start
LH: loop header
LB: loop body
LE: loop exit
PB: predicated region body
PF: predicated region fallthrough
CT: control target
= control target key end

     0   :  { %7 = vsyncpa [#allocation4], 0  ;;  %s1595_s0 = inlined_call_operand.vmem [shape: s32[16], index: 0, kind: input, shape index: {}]   ;;  %s1596_s1 = inlined_call_operand.vmem [shape: f32[104,128], index: 1, kind: input, shape index: {}]   ;;  %s1597_s2 = inlined_call_operand.hbm [shape: f32[2,128], index: 2, kind: output, shape index: {}]  }
   0x1   :  { %8 = vsyncpa [#allocation3], 0  ;;  %s15_s11 = sshll.u32 %s1595_s0, 4  ;;  %s16_s11 = int_to_ptr.vmem [resolvable:$true] %s15_s11 }
   0x2   :  { %s1281_s12 = scalar_lea.vmem %s16_s11, 16  ;;  %p1286_p1 = scmp.lt.s32.totalorder %s16_s11, %s16_s11 }
   0x3   :  { %p1282_p0 = scmp.ne.s32.totalorder %s16_s11, %s1281_s12  ;;  %p1287_p2 = scmp.lt.s32.totalorder %s1281_s12, %s1281_s12 }
   0x5   :  { %p1288_p3 = por %p1287_p2, %p1286_p1 }
   0x7   :  { %p1289_p4 = pnand %p1288_p3, %p1282_p0 }
   0x9   :  { %1292 = shalt.err (!%p1289_p4)
}
   0xa   :  { %s1317_s13 = smov [#allocation2]  }
   0xb   :  { %18 = dma.vmem_to_smem %s16_s11, 16, %s1317_s13, [#allocation4]  }
   0xc   :  { %1313 = dma.done.wait [#allocation4], 16  }
   0xd   :  { %1314 = vsyncadd [#allocation4], 4294967280 }
   0xe   :  { %24 = sfence }
   0xf   :  { %v1344_v0 = vld [vmem:[%s1596_s1 + $0x38] sm:$0xff]  ;;  %v1318_v1 = vmov 0.0   ;;  %v1350_v2 = vld [vmem:[%s1596_s1 + $0x30] sm:$0xff]  ;;  %vm1319_vm0 = vmmov 0   ;;  %v1360_v3 = vld [vmem:[%s1596_s1 + $0x28] sm:$0xff]  ;;  %s1045_s21 = sld [smem:[#allocation2 + $0x1]]  ;;  %v29_v5 = vlaneseq }
  0x10   :  { %1130 = vmatprep.subr.mxu0 %v1318_v1  ;;  %1138 = vmatprep.mubr.msk.f32.mxu0 %vm1319_vm0, %v1318_v1  ;;  %v1369_v4 = vld [vmem:[%s1596_s1 + $0x20] sm:$0xff]  ;;  %s34_s22 = sld [smem:[#allocation2]]  ;;  %vm43_vm1 = vcmask 1040384   ;;  %s1320_s29 = smov 64   ;;  %vm45_vm5 = vcmask 261120  }
  0x11   :  { %1131 = vmatpush3.msra.mxu0 %v1344_v0  ;;  %1141 = vmatprep.subr.mxu1 %v1318_v1  ;;  %v30_v8 = vand.u32 127, %v29_v5  ;;  %s1321_s30 = smov 32   ;;  %s1049_s3 = sld [smem:[#allocation2 + $0x3]] }
  0x12   :  { %1132 = vmatprep.subr.mxu0 %v1318_v1  ;;  %1142 = vmatpush3.msra.mxu1 %v1344_v0  ;;  %s1048_s4 = sld [smem:[#allocation2 + $0x2]]  ;;  %s1322_s14 = smov [#allocation5]  }
  0x13   :  { %1133 = vmatpush3.msra.mxu0 %v1350_v2  ;;  %1143 = vmatprep.subr.mxu1 %v1318_v1  ;;  %vm31_vm2 = vcmp.ge.s32.totalorder %v30_v8, 64  ;;  %vm32_vm3 = vcmp.lt.s32.totalorder %v30_v8, 96  ;;  %s1054_s11 = sld [smem:[#allocation2 + $0x5]] }
  0x14   :  { %1134 = vmatprep.subr.mxu0 %v1318_v1  ;;  %1144 = vmatpush3.msra.mxu1 %v1350_v2  ;;  %vm1401_vm4 = vmand %vm31_vm2, %vm32_vm3  ;;  %s1053_s12 = sld [smem:[#allocation2 + $0x4]] }
  0x15   :  { %1135 = vmatpush3.msra.mxu0 %v1360_v3  ;;  %1145 = vmatprep.subr.mxu1 %v1318_v1  ;;  %s38_s25 = scalar_lea.vmem %s1596_s1, %s1045_s21  ;;  %s1059_s18 = sld [smem:[#allocation2 + $0x7]] }
  0x16   :  { %1136 = vmatprep.subr.mxu0 %v1318_v1  ;;  %1146 = vmatpush3.msra.mxu1 %v1360_v3  ;;  %v39_v6 = vld [vmem:[%s38_s25] sm:$0x1]  ;;  %s35_s28 = scalar_lea.vmem %s1596_s1, %s34_s22  ;;  %s1058_s19 = sld [smem:[#allocation2 + $0x6]] }
  0x17   :  { %1137 = vmatpush3.msra.mxu0 %v1369_v4  ;;  %1147 = vmatprep.subr.mxu1 %v1318_v1  ;;  %v41_v7 = vrot.slane %v39_v6, 7  ;;  %v36_v9 = vld [vmem:[%s35_s28] sm:$0x1]  ;;  %s152_s7 = scalar_lea.vmem %s1596_s1, %s1049_s3  ;;  %s1064_s26 = sld [smem:[#allocation2 + $0x9]] }
  0x18   :  { %1139 = vmatmul.mubr.f32.vlgmr.msra.gmra.mxu0 %v1318_v1  ;;  %1148 = vmatpush3.msra.mxu1 %v1369_v4  ;;  %v153_v33 = vld [vmem:[%s152_s7] sm:$0x1]  ;;  %s149_s10 = scalar_lea.vmem %s1596_s1, %s1048_s4  ;;  %s1063_s27 = sld [smem:[#allocation2 + $0x8]] }
  0x19   :  { %1149 = vmatprep.mubr.msk.f32.mxu1 %vm1319_vm0, %v1318_v1  ;;  %1152 = vmatprep.subr.mxu0 %v1318_v1  ;;  %v44_v10 = vsel %vm43_vm1, %v36_v9, %v41_v7  ;;  %v155_v34 = vrot.slane %v153_v33, 7  ;;  %v150_v35 = vld [vmem:[%s149_s10] sm:$0x1]  ;;  %s266_s15 = scalar_lea.vmem %s1596_s1, %s1054_s11  ;;  %s1069_s8 = sld [smem:[#allocation2 + $0xb]] }
  0x1a   :  { %1153 = vmatpush3.msra.mxu0 %v1344_v0  ;;  %1160 = vmatprep.mubr.msk.f32.mxu0 %vm1319_vm0, %v1318_v1  ;;  %v267_v58 = vld [vmem:[%s266_s15] sm:$0x1]  ;;  %s263_s17 = scalar_lea.vmem %s1596_s1, %s1053_s12  ;;  %s1068_s9 = sld [smem:[#allocation2 + $0xa]] }
  0x1b   :  { %1154 = vmatprep.subr.mxu0 %v1318_v1  ;;  %1163 = vmatprep.subr.mxu1 %v1318_v1  ;;  %v157_v36 = vsel %vm43_vm1, %v150_v35, %v155_v34  ;;  %v269_v59 = vrot.slane %v267_v58, 7  ;;  %v264_v60 = vld [vmem:[%s263_s17] sm:$0x1]  ;;  %s380_s22 = scalar_lea.vmem %s1596_s1, %s1059_s18  ;;  %s1074_s0 = sld [smem:[#allocation2 + $0xd]] }
  0x1c   :  { %1155 = vmatpush3.msra.mxu0 %v1350_v2  ;;  %s377_s25 = scalar_lea.vmem %s1596_s1, %s1058_s19  ;;  %s1073_s16 = sld [smem:[#allocation2 + $0xc]] }
  0x1d   :  { %1156 = vmatprep.subr.mxu0 %v1318_v1  ;;  %v271_v61 = vsel %vm43_vm1, %v264_v60, %v269_v59  ;;  %s494_s4 = scalar_lea.vmem %s1596_s1, %s1064_s26  ;;  %s1078_s5 = sld [smem:[#allocation2 + $0xe]] }
  0x1e   :  { %1157 = vmatpush3.msra.mxu0 %v1360_v3  ;;  %s491_s7 = scalar_lea.vmem %s1596_s1, %s1063_s27 }
  0x1f   :  { %1158 = vmatprep.subr.mxu0 %v1318_v1  ;;  %s608_s12 = scalar_lea.vmem %s1596_s1, %s1069_s8 }
  0x20   :  { %1159 = vmatpush3.msra.mxu0 %v1369_v4  ;;  %s605_s15 = scalar_lea.vmem %s1596_s1, %s1068_s9 }
  0x21   :  { %1174 = vmatprep.subr.mxu0 %v1318_v1  ;;  %s722_s19 = scalar_lea.vmem %s1596_s1, %s1074_s0 }
  0x23   :  { %s833_s11 = scalar_lea.vmem %s1596_s1, %s1078_s5 }
  0xd8   :  { %v115_v11 = vpop.f32.mrf.mxu0 }
  0xd9   :  { %v119_v12 = vadd.f32 %v115_v11, %v44_v10 }
  0xda   :  { %v1140_v14 = vpop.f32.mrf.mxu0 }
  0xdb   :  { %v120_v15 = vadd.f32 %v119_v12, %v119_v12 }
  0xdd   :  { %v121_v16 = vsel %vm1401_vm4, %v120_v15, %v119_v12 }
  0xde   :  { %v1046_v17 = vmul.f32 -1.442695, %v121_v16 }
  0xe0   :  { %1235 = vpow2.f32 %v1046_v17 }
  0xed   :  { %v1236_v18 = vpop.eup %1235 }
  0xee   :  { %v125_v19 = vadd.f32 1.0, %v1236_v18 }
  0xf0   :  { %1237 = vrcp.f32 %v125_v19 }
  0xfd   :  { %v1238_v20 = vpop.eup %1237 }
  0xfe   :  { %v128_v21 = vadd.f32 %v1238_v20, %v1238_v20 }
 0x100   :  { %v1047_v22 = vadd.f32 -1.0, %v128_v21 }
 0x102   :  { %v130_v23 = vsel %vm1401_vm4, %v1047_v22, %v1238_v20 }
 0x103   :  { %133 = vrot.lane.b32.xlu0 %v130_v23, %s1320_s29  ;;  %v131_v26 = vmul.f32 0.0, %v130_v23 }
 0x175   :  { %v134_v24 = vpop.permute.xlu0 %133 }
 0x176   :  { %v136_v25 = vmul.f32 %v134_v24, %v130_v23 }
 0x178   :  { %138 = vrot.lane.b32.xlu0 %v136_v25, %s1321_s30  ;;  %v381_v25 = vld [vmem:[%s380_s22] sm:$0x1]  ;;  %s719_s22 = scalar_lea.vmem %s1596_s1, %s1073_s16 }
 0x1ea   :  { %v139_v27 = vpop.permute.xlu0 %138 }
 0x1eb   :  { %v141_v28 = vadd.f32 %v139_v27, %v131_v26  ;;  %v383_v26 = vrot.slane %v381_v25, 7  ;;  %v378_v27 = vld [vmem:[%s377_s25] sm:$0x1] }
 0x1ed   :  { %1239 = vtanh.f32 %v141_v28 }
 0x1fa   :  { %v1240_v29 = vpop.eup %1239 }
 0x1fb   :  { %144 = vrot.lane.b32.xlu1 %v1240_v29, %s1320_s29 }
 0x26d   :  { %v145_v30 = vpop.permute.xlu1 %144 }
 0x26e   :  { %v147_v31 = vmul.f32 %v145_v30, %v130_v23 }
 0x270   :  { %159 = vrot.lane.b32.xlu1 %v147_v31, %s1321_s30 }
 0x2e2   :  { %v160_v32 = vpop.permute.xlu1 %159 }
 0x2e3   :  { %1150 = vmatmul.mubr.msk.f32.vlgmr.msra.gmra.mxu1 %vm45_vm5, %v160_v32 }
 0x2e4   :  { %1164 = vmatpush3.msra.mxu1 %v1344_v0  ;;  %1171 = vmatprep.mubr.msk.f32.mxu1 %vm1319_vm0, %v1318_v1 }
 0x2e5   :  { %1165 = vmatprep.subr.mxu1 %v1318_v1 }
 0x2e6   :  { %1166 = vmatpush3.msra.mxu1 %v1350_v2 }
 0x2e7   :  { %1167 = vmatprep.subr.mxu1 %v1318_v1 }
 0x2e8   :  { %1168 = vmatpush3.msra.mxu1 %v1360_v3 }
 0x2e9   :  { %1169 = vmatprep.subr.mxu1 %v1318_v1 }
 0x2ea   :  { %1170 = vmatpush3.msra.mxu1 %v1369_v4 }
 0x2eb   :  { %1185 = vmatprep.subr.mxu1 %v1318_v1 }
 0x3a3   :  { %v229_v37 = vpop.f32.mrf.mxu1 }
 0x3a4   :  { %v233_v38 = vadd.f32 %v229_v37, %v157_v36 }
 0x3a5   :  { %v1151_v39 = vpop.f32.mrf.mxu1 }
 0x3a6   :  { %v234_v40 = vadd.f32 %v233_v38, %v233_v38 }
 0x3a8   :  { %v235_v41 = vsel %vm1401_vm4, %v234_v40, %v233_v38 }
 0x3a9   :  { %v1051_v42 = vmul.f32 -1.442695, %v235_v41 }
 0x3ab   :  { %1241 = vpow2.f32 %v1051_v42 }
 0x3b8   :  { %v1242_v43 = vpop.eup %1241 }
 0x3b9   :  { %v239_v44 = vadd.f32 1.0, %v1242_v43 }
 0x3bb   :  { %1243 = vrcp.f32 %v239_v44 }
 0x3c8   :  { %v1244_v45 = vpop.eup %1243 }
 0x3c9   :  { %v242_v46 = vadd.f32 %v1244_v45, %v1244_v45 }
 0x3cb   :  { %v1052_v47 = vadd.f32 -1.0, %v242_v46 }
 0x3cd   :  { %v244_v48 = vsel %vm1401_vm4, %v1052_v47, %v1244_v45 }
 0x3ce   :  { %247 = vrot.lane.b32.xlu0 %v244_v48, %s1320_s29  ;;  %v245_v51 = vmul.f32 %v244_v48, %v141_v28  ;;  %v385_v28 = vsel %vm43_vm1, %v378_v27, %v383_v26 }
 0x440   :  { %v248_v49 = vpop.permute.xlu0 %247 }
 0x441   :  { %v250_v50 = vmul.f32 %v248_v49, %v244_v48 }
 0x443   :  { %252 = vrot.lane.b32.xlu1 %v250_v50, %s1321_s30  ;;  %v495_v50 = vld [vmem:[%s494_s4] sm:$0x1]  ;;  %s1079_s4 = sld [smem:[#allocation2 + $0xf]] }
 0x449   :  { %s836_s8 = scalar_lea.vmem %s1596_s1, %s1079_s4 }
 0x4b5   :  { %v253_v52 = vpop.permute.xlu1 %252 }
 0x4b6   :  { %v255_v53 = vadd.f32 %v253_v52, %v245_v51  ;;  %v497_v51 = vrot.slane %v495_v50, 7  ;;  %v492_v52 = vld [vmem:[%s491_s7] sm:$0x1] }
 0x4b8   :  { %1245 = vtanh.f32 %v255_v53 }
 0x4c5   :  { %v1246_v54 = vpop.eup %1245 }
 0x4c6   :  { %258 = vrot.lane.b32.xlu0 %v1246_v54, %s1320_s29 }
 0x538   :  { %v259_v55 = vpop.permute.xlu0 %258 }
 0x539   :  { %v261_v56 = vmul.f32 %v259_v55, %v244_v48 }
 0x53b   :  { %273 = vrot.lane.b32.xlu1 %v261_v56, %s1321_s30 }
 0x5ad   :  { %v274_v57 = vpop.permute.xlu1 %273 }
 0x5ae   :  { %1161 = vmatmul.mubr.msk.f32.vlgmr.msra.gmra.mxu0 %vm45_vm5, %v274_v57 }
 0x5af   :  { %1175 = vmatpush3.msra.mxu0 %v1344_v0  ;;  %1182 = vmatprep.mubr.msk.f32.mxu0 %vm1319_vm0, %v1318_v1 }
 0x5b0   :  { %1176 = vmatprep.subr.mxu0 %v1318_v1 }
 0x5b1   :  { %1177 = vmatpush3.msra.mxu0 %v1350_v2 }
 0x5b2   :  { %1178 = vmatprep.subr.mxu0 %v1318_v1 }
 0x5b3   :  { %1179 = vmatpush3.msra.mxu0 %v1360_v3 }
 0x5b4   :  { %1180 = vmatprep.subr.mxu0 %v1318_v1 }
 0x5b5   :  { %1181 = vmatpush3.msra.mxu0 %v1369_v4 }
 0x5b6   :  { %1196 = vmatprep.subr.mxu0 %v1318_v1 }
 0x66e   :  { %v343_v62 = vpop.f32.mrf.mxu0 }
 0x66f   :  { %v347_v63 = vadd.f32 %v343_v62, %v271_v61 }
 0x670   :  { %v1162_v5 = vpop.f32.mrf.mxu0 }
 0x671   :  { %v348_v6 = vadd.f32 %v347_v63, %v347_v63 }
 0x673   :  { %v349_v7 = vsel %vm1401_vm4, %v348_v6, %v347_v63 }
 0x674   :  { %v1056_v8 = vmul.f32 -1.442695, %v349_v7 }
 0x676   :  { %1247 = vpow2.f32 %v1056_v8 }
 0x683   :  { %v1248_v9 = vpop.eup %1247 }
 0x684   :  { %v353_v10 = vadd.f32 1.0, %v1248_v9 }
 0x686   :  { %1249 = vrcp.f32 %v353_v10 }
 0x693   :  { %v1250_v11 = vpop.eup %1249 }
 0x694   :  { %v356_v12 = vadd.f32 %v1250_v11, %v1250_v11 }
 0x696   :  { %v1057_v14 = vadd.f32 -1.0, %v356_v12 }
 0x698   :  { %v358_v15 = vsel %vm1401_vm4, %v1057_v14, %v1250_v11 }
 0x699   :  { %361 = vrot.lane.b32.xlu0 %v358_v15, %s1320_s29  ;;  %v359_v18 = vmul.f32 %v358_v15, %v255_v53  ;;  %v499_v53 = vsel %vm43_vm1, %v492_v52, %v497_v51 }
 0x70b   :  { %v362_v16 = vpop.permute.xlu0 %361 }
 0x70c   :  { %v364_v17 = vmul.f32 %v362_v16, %v358_v15 }
 0x70e   :  { %366 = vrot.lane.b32.xlu1 %v364_v17, %s1321_s30  ;;  %v606_v17 = vld [vmem:[%s605_s15] sm:$0x1]  ;;  %s1020_s15 = sshll.u32 %s1322_s14, 4  ;;  %s1021_s15 = int_to_ptr.vmem [resolvable:$true] %s1020_s15 }
 0x70f   :  { %s1293_s0 = scalar_lea.vmem %s1021_s15, 32  ;;  %p1298_p6 = scmp.lt.s32.totalorder %s1021_s15, %s1021_s15 }
 0x710   :  { %p1294_p5 = scmp.ne.s32.totalorder %s1021_s15, %s1293_s0  ;;  %p1299_p7 = scmp.lt.s32.totalorder %s1293_s0, %s1293_s0 }
 0x712   :  { %p1300_p8 = por %p1299_p7, %p1298_p6 }
 0x714   :  { %p1301_p9 = pnand %p1300_p8, %p1294_p5 }
 0x780   :  { %v367_v19 = vpop.permute.xlu1 %366 }
 0x781   :  { %v369_v20 = vadd.f32 %v367_v19, %v359_v18 }
 0x783   :  { %1251 = vtanh.f32 %v369_v20 }
 0x790   :  { %v1252_v21 = vpop.eup %1251 }
 0x791   :  { %372 = vrot.lane.b32.xlu0 %v1252_v21, %s1320_s29 }
 0x803   :  { %v373_v22 = vpop.permute.xlu0 %372 }
 0x804   :  { %v375_v23 = vmul.f32 %v373_v22, %v358_v15 }
 0x806   :  { %387 = vrot.lane.b32.xlu1 %v375_v23, %s1321_s30 }
 0x878   :  { %v388_v24 = vpop.permute.xlu1 %387 }
 0x879   :  { %1172 = vmatmul.mubr.msk.f32.vlgmr.msra.gmra.mxu1 %vm45_vm5, %v388_v24 }
 0x87a   :  { %1186 = vmatpush3.msra.mxu1 %v1344_v0  ;;  %1193 = vmatprep.mubr.msk.f32.mxu1 %vm1319_vm0, %v1318_v1 }
 0x87b   :  { %1187 = vmatprep.subr.mxu1 %v1318_v1 }
 0x87c   :  { %1188 = vmatpush3.msra.mxu1 %v1350_v2 }
 0x87d   :  { %1189 = vmatprep.subr.mxu1 %v1318_v1 }
 0x87e   :  { %1190 = vmatpush3.msra.mxu1 %v1360_v3 }
 0x87f   :  { %1191 = vmatprep.subr.mxu1 %v1318_v1 }
 0x880   :  { %1192 = vmatpush3.msra.mxu1 %v1369_v4 }
 0x881   :  { %1207 = vmatprep.subr.mxu1 %v1318_v1 }
 0x939   :  { %v457_v29 = vpop.f32.mrf.mxu1 }
 0x93a   :  { %v461_v30 = vadd.f32 %v457_v29, %v385_v28 }
 0x93b   :  { %v1173_v31 = vpop.f32.mrf.mxu1 }
 0x93c   :  { %v462_v32 = vadd.f32 %v461_v30, %v461_v30 }
 0x93e   :  { %v463_v33 = vsel %vm1401_vm4, %v462_v32, %v461_v30 }
 0x93f   :  { %v1061_v34 = vmul.f32 -1.442695, %v463_v33 }
 0x941   :  { %1253 = vpow2.f32 %v1061_v34 }
 0x94e   :  { %v1254_v35 = vpop.eup %1253 }
 0x94f   :  { %v467_v36 = vadd.f32 1.0, %v1254_v35 }
 0x951   :  { %1255 = vrcp.f32 %v467_v36 }
 0x95e   :  { %v1256_v37 = vpop.eup %1255 }
 0x95f   :  { %v470_v38 = vadd.f32 %v1256_v37, %v1256_v37 }
 0x961   :  { %v1062_v39 = vadd.f32 -1.0, %v470_v38  ;;  %v723_v38 = vld [vmem:[%s722_s19] sm:$0x1] }
 0x963   :  { %v472_v40 = vsel %vm1401_vm4, %v1062_v39, %v1256_v37  ;;  %v725_v39 = vrot.slane %v723_v38, 7 }
 0x964   :  { %475 = vrot.lane.b32.xlu0 %v472_v40, %s1320_s29  ;;  %v473_v43 = vmul.f32 %v472_v40, %v369_v20 }
 0x9d6   :  { %v476_v41 = vpop.permute.xlu0 %475 }
 0x9d7   :  { %v478_v42 = vmul.f32 %v476_v41, %v472_v40 }
 0x9d9   :  { %480 = vrot.lane.b32.xlu1 %v478_v42, %s1321_s30 }
 0xa4b   :  { %v481_v44 = vpop.permute.xlu1 %480 }
 0xa4c   :  { %v483_v45 = vadd.f32 %v481_v44, %v473_v43 }
 0xa4e   :  { %1257 = vtanh.f32 %v483_v45 }
 0xa5b   :  { %v1258_v46 = vpop.eup %1257 }
 0xa5c   :  { %486 = vrot.lane.b32.xlu0 %v1258_v46, %s1320_s29 }
 0xace   :  { %v487_v47 = vpop.permute.xlu0 %486 }
 0xacf   :  { %v489_v48 = vmul.f32 %v487_v47, %v472_v40  ;;  %v720_v40 = vld [vmem:[%s719_s22] sm:$0x1] }
 0xad0   :  { %v727_v41 = vsel %vm43_vm1, %v720_v40, %v725_v39 }
 0xad1   :  { %501 = vrot.lane.b32.xlu1 %v489_v48, %s1321_s30 }
 0xb43   :  { %v502_v49 = vpop.permute.xlu1 %501 }
 0xb44   :  { %1183 = vmatmul.mubr.msk.f32.vlgmr.msra.gmra.mxu0 %vm45_vm5, %v502_v49 }
 0xb45   :  { %1197 = vmatpush3.msra.mxu0 %v1344_v0  ;;  %1204 = vmatprep.mubr.msk.f32.mxu0 %vm1319_vm0, %v1318_v1 }
 0xb46   :  { %1198 = vmatprep.subr.mxu0 %v1318_v1 }
 0xb47   :  { %1199 = vmatpush3.msra.mxu0 %v1350_v2 }
 0xb48   :  { %1200 = vmatprep.subr.mxu0 %v1318_v1 }
 0xb49   :  { %1201 = vmatpush3.msra.mxu0 %v1360_v3 }
 0xb4a   :  { %1202 = vmatprep.subr.mxu0 %v1318_v1 }
 0xb4b   :  { %1203 = vmatpush3.msra.mxu0 %v1369_v4 }
 0xb4c   :  { %1218 = vmatprep.subr.mxu0 %v1318_v1 }
 0xc04   :  { %v571_v54 = vpop.f32.mrf.mxu0 }
 0xc05   :  { %v575_v55 = vadd.f32 %v571_v54, %v499_v53 }
 0xc06   :  { %v1184_v56 = vpop.f32.mrf.mxu0 }
 0xc07   :  { %v576_v57 = vadd.f32 %v575_v55, %v575_v55 }
 0xc09   :  { %v577_v58 = vsel %vm1401_vm4, %v576_v57, %v575_v55 }
 0xc0a   :  { %v1066_v59 = vmul.f32 -1.442695, %v577_v58 }
 0xc0c   :  { %1259 = vpow2.f32 %v1066_v59 }
 0xc19   :  { %v1260_v60 = vpop.eup %1259 }
 0xc1a   :  { %v581_v61 = vadd.f32 1.0, %v1260_v60 }
 0xc1c   :  { %1261 = vrcp.f32 %v581_v61 }
 0xc29   :  { %v1262_v62 = vpop.eup %1261 }
 0xc2a   :  { %v584_v63 = vadd.f32 %v1262_v62, %v1262_v62 }
 0xc2c   :  { %v1067_v5 = vadd.f32 -1.0, %v584_v63  ;;  %v932_v63 = vld [vmem:[%s1596_s1 + $0x58] sm:$0xff] }
 0xc2e   :  { %v586_v6 = vsel %vm1401_vm4, %v1067_v5, %v1262_v62  ;;  %v931_v5 = vld [vmem:[%s1596_s1 + $0x50] sm:$0xff] }
 0xc2f   :  { %589 = vrot.lane.b32.xlu0 %v586_v6, %s1320_s29  ;;  %v587_v9 = vmul.f32 %v586_v6, %v483_v45 }
 0xca1   :  { %v590_v7 = vpop.permute.xlu0 %589 }
 0xca2   :  { %v592_v8 = vmul.f32 %v590_v7, %v586_v6  ;;  %v929_v7 = vld [vmem:[%s1596_s1 + $0x40] sm:$0xff] }
 0xca4   :  { %594 = vrot.lane.b32.xlu1 %v592_v8, %s1321_s30  ;;  %v837_v8 = vld [vmem:[%s836_s8] sm:$0x1] }
 0xd16   :  { %v595_v10 = vpop.permute.xlu1 %594 }
 0xd17   :  { %v597_v11 = vadd.f32 %v595_v10, %v587_v9  ;;  %v839_v9 = vrot.slane %v837_v8, 7  ;;  %v834_v10 = vld [vmem:[%s833_s11] sm:$0x1] }
 0xd19   :  { %1263 = vtanh.f32 %v597_v11 }
 0xd26   :  { %v1264_v12 = vpop.eup %1263 }
 0xd27   :  { %600 = vrot.lane.b32.xlu0 %v1264_v12, %s1320_s29 }
 0xd99   :  { %v601_v14 = vpop.permute.xlu0 %600 }
 0xd9a   :  { %v603_v15 = vmul.f32 %v601_v14, %v586_v6  ;;  %v930_v6 = vld [vmem:[%s1596_s1 + $0x48] sm:$0xff] }
 0xd9c   :  { %615 = vrot.lane.b32.xlu1 %v603_v15, %s1321_s30 }
 0xe0e   :  { %v616_v16 = vpop.permute.xlu1 %615 }
 0xe0f   :  { %1194 = vmatmul.mubr.msk.f32.vlgmr.msra.gmra.mxu1 %vm45_vm5, %v616_v16 }
 0xe10   :  { %1208 = vmatpush3.msra.mxu1 %v1344_v0  ;;  %1215 = vmatprep.mubr.msk.f32.mxu1 %vm1319_vm0, %v1318_v1  ;;  %v609_v0 = vld [vmem:[%s608_s12] sm:$0x1] }
 0xe11   :  { %1209 = vmatprep.subr.mxu1 %v1318_v1 }
 0xe12   :  { %1210 = vmatpush3.msra.mxu1 %v1350_v2  ;;  %v611_v2 = vrot.slane %v609_v0, 7 }
 0xe13   :  { %1211 = vmatprep.subr.mxu1 %v1318_v1 }
 0xe14   :  { %1212 = vmatpush3.msra.mxu1 %v1360_v3  ;;  %v613_v18 = vsel %vm43_vm1, %v606_v17, %v611_v2 }
 0xe15   :  { %1213 = vmatprep.subr.mxu1 %v1318_v1 }
 0xe16   :  { %1214 = vmatpush3.msra.mxu1 %v1369_v4 }
 0xecf   :  { %v685_v3 = vpop.f32.mrf.mxu1 }
 0xed0   :  { %v689_v19 = vadd.f32 %v685_v3, %v613_v18 }
 0xed1   :  { %v1195_v20 = vpop.f32.mrf.mxu1 }
 0xed2   :  { %v690_v21 = vadd.f32 %v689_v19, %v689_v19 }
 0xed4   :  { %v691_v4 = vsel %vm1401_vm4, %v690_v21, %v689_v19 }
 0xed5   :  { %v1071_v22 = vmul.f32 -1.442695, %v691_v4  ;;  %v1083_v4 = vld [vmem:[%s1596_s1 + $0x60] ss:$0 sm:$0xff] }
 0xed7   :  { %1265 = vpow2.f32 %v1071_v22 }
 0xee4   :  { %v1266_v23 = vpop.eup %1265 }
 0xee5   :  { %v695_v24 = vadd.f32 1.0, %v1266_v23 }
 0xee7   :  { %1267 = vrcp.f32 %v695_v24 }
 0xef4   :  { %v1268_v25 = vpop.eup %1267 }
 0xef5   :  { %v698_v26 = vadd.f32 %v1268_v25, %v1268_v25 }
 0xef7   :  { %v1072_v27 = vadd.f32 -1.0, %v698_v26 }
 0xef9   :  { %v700_v28 = vsel %vm1401_vm4, %v1072_v27, %v1268_v25 }
 0xefa   :  { %703 = vrot.lane.b32.xlu0 %v700_v28, %s1320_s29  ;;  %v701_v31 = vmul.f32 %v700_v28, %v597_v11  ;;  %v841_v11 = vsel %vm43_vm1, %v834_v10, %v839_v9 }
 0xf6c   :  { %v704_v29 = vpop.permute.xlu0 %703 }
 0xf6d   :  { %v706_v30 = vmul.f32 %v704_v29, %v700_v28 }
 0xf6f   :  { %708 = vrot.lane.b32.xlu1 %v706_v30, %s1321_s30 }
 0xfe1   :  { %v709_v32 = vpop.permute.xlu1 %708 }
 0xfe2   :  { %v711_v33 = vadd.f32 %v709_v32, %v701_v31 }
 0xfe4   :  { %1269 = vtanh.f32 %v711_v33 }
 0xff1   :  { %v1270_v34 = vpop.eup %1269 }
 0xff2   :  { %714 = vrot.lane.b32.xlu0 %v1270_v34, %s1320_s29 }
0x1064   :  { %v715_v35 = vpop.permute.xlu0 %714 }
0x1065   :  { %v717_v36 = vmul.f32 %v715_v35, %v700_v28 }
0x1067   :  { %729 = vrot.lane.b32.xlu1 %v717_v36, %s1321_s30 }
0x10d9   :  { %v730_v37 = vpop.permute.xlu1 %729 }
0x10da   :  { %1205 = vmatmul.mubr.msk.f32.vlgmr.msra.gmra.mxu0 %vm45_vm5, %v730_v37 }
0x10db   :  { %1226 = vmatprep.mubr.msk.f32.mxu0 %vm1319_vm0, %v1318_v1  ;;  %1219 = vmatpush3.msra.mxu0 %v932_v63 }
0x10dc   :  { %1220 = vmatprep.subr.mxu0 %v1318_v1 }
0x10dd   :  { %1221 = vmatpush3.msra.mxu0 %v931_v5 }
0x10de   :  { %1222 = vmatprep.subr.mxu0 %v1318_v1 }
0x10df   :  { %1223 = vmatpush3.msra.mxu0 %v930_v6 }
0x10e0   :  { %1224 = vmatprep.subr.mxu0 %v1318_v1 }
0x10e1   :  { %1225 = vmatpush3.msra.mxu0 %v929_v7 }
0x119a   :  { %v799_v42 = vpop.f32.mrf.mxu0 }
0x119b   :  { %v803_v43 = vadd.f32 %v799_v42, %v727_v41 }
0x119c   :  { %v1206_v44 = vpop.f32.mrf.mxu0 }
0x119d   :  { %v804_v45 = vadd.f32 %v803_v43, %v803_v43 }
0x119f   :  { %v805_v46 = vsel %vm1401_vm4, %v804_v45, %v803_v43 }
0x11a0   :  { %v1076_v47 = vmul.f32 -1.442695, %v805_v46 }
0x11a2   :  { %1271 = vpow2.f32 %v1076_v47 }
0x11af   :  { %v1272_v48 = vpop.eup %1271 }
0x11b0   :  { %v809_v49 = vadd.f32 1.0, %v1272_v48 }
0x11b2   :  { %1273 = vrcp.f32 %v809_v49 }
0x11bf   :  { %v1274_v50 = vpop.eup %1273 }
0x11c0   :  { %v812_v51 = vadd.f32 %v1274_v50, %v1274_v50 }
0x11c2   :  { %v1077_v52 = vadd.f32 -1.0, %v812_v51 }
0x11c4   :  { %v814_v53 = vsel %vm1401_vm4, %v1077_v52, %v1274_v50 }
0x11c5   :  { %817 = vrot.lane.b32.xlu0 %v814_v53, %s1320_s29  ;;  %v815_v56 = vmul.f32 %v814_v53, %v711_v33 }
0x1237   :  { %v818_v54 = vpop.permute.xlu0 %817 }
0x1238   :  { %v820_v55 = vmul.f32 %v818_v54, %v814_v53 }
0x123a   :  { %822 = vrot.lane.b32.xlu1 %v820_v55, %s1321_s30 }
0x12ac   :  { %v823_v57 = vpop.permute.xlu1 %822 }
0x12ad   :  { %v825_v58 = vadd.f32 %v823_v57, %v815_v56 }
0x12af   :  { %1275 = vtanh.f32 %v825_v58 }
0x12bc   :  { %v1276_v59 = vpop.eup %1275 }
0x12bd   :  { %828 = vrot.lane.b32.xlu0 %v1276_v59, %s1320_s29 }
0x132f   :  { %v829_v60 = vpop.permute.xlu0 %828 }
0x1330   :  { %v831_v61 = vmul.f32 %v829_v60, %v814_v53 }
0x1332   :  { %843 = vrot.lane.b32.xlu1 %v831_v61, %s1321_s30 }
0x13a4   :  { %v844_v62 = vpop.permute.xlu1 %843 }
0x13a5   :  { %1216 = vmatmul.mubr.msk.f32.vlgmr.msra.gmra.mxu1 %vm45_vm5, %v844_v62 }
0x1465   :  { %v913_v12 = vpop.f32.mrf.mxu1 }
0x1466   :  { %v917_v14 = vadd.f32 %v913_v12, %v841_v11 }
0x1467   :  { %v1217_v15 = vpop.f32.mrf.mxu1 }
0x1468   :  { %v918_v1 = vadd.f32 %v917_v14, %v917_v14 }
0x146a   :  { %v919_v16 = vsel %vm1401_vm4, %v918_v1, %v917_v14 }
0x146b   :  { %v1081_v0 = vmul.f32 -1.442695, %v919_v16 }
0x146d   :  { %1277 = vpow2.f32 %v1081_v0 }
0x147a   :  { %v1278_v2 = vpop.eup %1277 }
0x147b   :  { %v923_v17 = vadd.f32 1.0, %v1278_v2 }
0x147d   :  { %1279 = vrcp.f32 %v923_v17 }
0x148a   :  { %v1280_v18 = vpop.eup %1279 }
0x148b   :  { %v926_v3 = vadd.f32 %v1280_v18, %v1280_v18 }
0x148d   :  { %v1082_v19 = vadd.f32 -1.0, %v926_v3 }
0x148f   :  { %v928_v20 = vsel %vm1401_vm4, %v1082_v19, %v1280_v18 }
0x1490   :  { %939 = vrot.lane.b32.xlu0 %v928_v20, %s1321_s30 }
0x1502   :  { %v940_v21 = vpop.permute.xlu0 %939 }
0x1503   :  { %1227 = vmatmul.mubr.msk.f32.vlgmr.msra.gmra.mxu0 %vm45_vm5, %v940_v21 }
0x15c3   :  { %v1009_v22 = vpop.f32.mrf.mxu0 }
0x15c4   :  { %v1010_v23 = vadd.f32 %v1083_v4, %v1009_v22 }
0x15c5   :  { %v1228_v24 = vpop.f32.mrf.mxu0 }
0x15c6   :  { %1013 = vst [vmem:[#allocation5] sm:$0x3] %v1010_v23 }
0x15c7   :  { %1304 = shalt.err (!%p1301_p9)
}
0x15c8   :  { %1023 = dma.vmem_to_hbm [thread:$0]  %s1021_s15, 32, %s1597_s2, [#allocation3]  }
0x15c9   :  { %1315 = dma.done.wait [#allocation3], 32  }
0x15ca   :  { %1316 = vsyncadd [#allocation3], 4294967264 }
0x15cb   :  { %1027 = vsyncpa [#allocation3], 1 }
0x15cc   :  { %1028 = vsyncpa [#allocation4], 1 }

</bundles_post_ra>
